<compile_context>
chip_gen: v7x
topology: tpu7x:2x2x1
jax: 0.10.0
libtpu: 0.0.40
codegen_flags: <defaults>
</compile_context>

<pallas_src>
import math

import jax
import jax.numpy as jnp
import numpy as np
from jax.experimental import pallas as pl
from jax.experimental.pallas import tpu as pltpu

NUM_VARIATION_TYPES = 5   # len(Variation): SNV, INSERTION, DELETION, BIG_INSERTION, BIG_DELETION
MAX_MEAN = 0.001          # max_mean passed to NormalSeqErrorSpectrum.__init__
NUM_QUAD = 16             # Gauss-Legendre quadrature points
LANE = 128

_gl_nodes_np, _gl_weights_np = np.polynomial.legendre.leggauss(NUM_QUAD)
# Per-node Python-time constants: (c, log(c), c^2, log(w/2)), c = (1+node)/2 in (0,1).
_QUAD_CONSTS = [
    (float(0.5 * (1.0 + x)),
     float(math.log(0.5 * (1.0 + x))),
     float((0.5 * (1.0 + x)) ** 2),
     float(math.log(0.5 * w)))
    for x, w in zip(_gl_nodes_np, _gl_weights_np)
]
_LOG_2PI = math.log(2.0 * math.pi)


def _stirling_shift4(z):
    """Returns (S, prod) with lgamma(z) = S - log(prod) + 0.5*log(2*pi), for z >= 1.

    prod = z*(z+1)*(z+2)*(z+3) (stays in f32 range for z up to ~4e9);
    S is the 3-term Stirling series evaluated at z+4 >= 5 (error ~1e-8).
    The log(prod) correction is NOT taken here so the caller can merge the three
    corrections of a log-binomial-coefficient into a single EUP log.
    """
    z1 = z + 1.0
    z2 = z + 2.0
    z3 = z + 3.0
    z4 = z + 4.0
    prod = (z * z1) * (z2 * z3)
    inv = pl.reciprocal(z4, approx=True)      # EUP vrcp; error ~2^-12 on a <=0.017 series
    inv2 = inv * inv
    series = inv * (1.0 / 12.0 - inv2 * (1.0 / 360.0 - inv2 * (1.0 / 1260.0)))
    s = (z4 - 0.5) * jnp.log(z4) - z4 + series
    return s, prod


def _nses_kernel(ref_ref, alt_ref, x2_ref, logx2_ref, out_ref):
    k = alt_ref[...]
    nk = ref_ref[...]            # n - k == ref counts
    n = k + nk
    x2 = x2_ref[...]
    log_x2 = logx2_ref[...]

    # log C(n, k) = lgamma(n+1) - lgamma(k+1) - lgamma(nk+1); merged shift correction:
    # one log of pk*(pr/pn) (divide first so the product never overflows f32).
    sn, pn = _stirling_shift4(n + 1.0)
    sk, pk = _stirling_shift4(k + 1.0)
    sr, pr = _stirling_shift4(nk + 1.0)
    log_comb = (sn - sk - sr) - 0.5 * _LOG_2PI + jnp.log(pk * (pr / pn))

    # uniform-binomial log lk = log[ (1/x2) * int_0^{x2} Binom(k|n,p) dp ], 16-pt GL with
    # p = x2*c_i.  Quadratic log1p:  nk*log(1 - x2*c) ~= -q1*c - q2*c^2,
    # q1 = nk*x2, q2 = nk*x2^2/2 (cubic term dropped; error <= nk*x2^3/3 <~ 1e-6).
    q1 = nk * x2
    q2 = (0.5 * q1) * x2
    base = q1 + q2                       # = -nk*log1m(x2): fixed logsumexp offset
    m0 = log_comb + k * log_x2 - base    # = log Binom(k | n, x2)

    # Each node term is independent (no serial running-max chain) -> pipelines through EUP.
    s = jnp.zeros_like(k)
    for c, lc, c2, lw in _QUAD_CONSTS:
        t = (base + lw) + k * lc - q1 * c - q2 * c2
        s = s + jnp.exp(t)
    out_ref[...] = m0 + jnp.log(s)


def _pick_tile_rows(rows: int) -> int:
    """Largest multiple-of-8 row tile <= 512 keeping >= ~4 grid steps when possible."""
    for t in (512, 256, 128, 64, 32, 16, 8):
        if rows >= 4 * t:
            return t
    return 8


def normal_seq_error_spectrum(means_pre_sigmoid_v, ref_counts_b, alt_counts_b,
                              var_types_b, max_mean=MAX_MEAN):
    """JAX wrapper: lays the batch out as (rows, 128) f32 and calls the kernel.

    Documented preconditions (consequences of the in-kernel approximations):
      * max_mean <= 0.01         (quadratic log1p of p <= 2*max_mean)
      * depth n = ref+alt <~ 1e9 (Stirling shift product stays inside f32 range)
      * ref * 2*max_mean <~ 80   (fixed-offset logsumexp exponents stay inside f32 range)
    """
    assert 0.0 < float(max_mean) <= 0.01, "kernel assumes max_mean <= 0.01"

    b = ref_counts_b.shape[0]
    rows = -(-b // LANE)
    tile_r = _pick_tile_rows(rows)
    steps = -(-rows // tile_r)
    if steps > 1 and steps % 2:
        steps += 1                    # even step count -> balanced megacore split on v7x
    rows_pad = steps * tile_r
    total = rows_pad * LANE
    pad = total - b

    # 5 sigmoids computed once, per-element gather done in the wrapper (XLA), so the
    # kernel gets lane-dense f32 x2 / log(x2) inputs and has no select chain.
    x2_v = (2.0 * float(max_mean)) * jax.nn.sigmoid(means_pre_sigmoid_v.astype(jnp.float32))
    log_x2_v = jnp.log(x2_v)
    vt_flat = jnp.pad(var_types_b.astype(jnp.int32), (0, pad))   # pad -> type 0 (finite math)
    x2_p = x2_v[vt_flat].reshape(rows_pad, LANE)
    logx2_p = log_x2_v[vt_flat].reshape(rows_pad, LANE)

    ref_p = jnp.pad(ref_counts_b.astype(jnp.float32), (0, pad)).reshape(rows_pad, LANE)
    alt_p = jnp.pad(alt_counts_b.astype(jnp.float32), (0, pad)).reshape(rows_pad, LANE)

    spec = pl.BlockSpec((tile_r, LANE), lambda i: (i, 0))
    out = pl.pallas_call(
        _nses_kernel,
        out_shape=jax.ShapeDtypeStruct((rows_pad, LANE), jnp.float32),
        grid=(steps,),
        in_specs=[spec, spec, spec, spec],
        out_specs=spec,
        compiler_params=pltpu.CompilerParams(dimension_semantics=("parallel",)),
        cost_estimate=pl.CostEstimate(flops=230 * total,
                                      transcendentals=24 * total,
                                      bytes_accessed=20 * total),
    )(ref_p, alt_p, x2_p, logx2_p)
    return out.reshape(total)[:b]


def _reference_forward_np(means, ref_counts, alt_counts, var_types, max_mean, num_quad=64):
    """High-precision reference: float64 numpy, exact lgamma, 64-point Gauss-Legendre."""
    means = np.asarray(means, np.float64)
    ref_counts = np.asarray(ref_counts, np.float64)
    alt_counts = np.asarray(alt_counts, np.float64)
    var_types = np.asarray(var_types, np.int64)
    x2 = 2.0 * max_mean / (1.0 + np.exp(-means[var_types]))
    n = ref_counts + alt_counts
    k = alt_counts
    lgamma = np.vectorize(math.lgamma)
    log_comb = lgamma(n + 1.0) - lgamma(k + 1.0) - lgamma(n - k + 1.0)
    nodes, weights = np.polynomial.legendre.leggauss(num_quad)
    terms = []
    for x, w in zip(nodes, weights):
        p = 0.5 * x2 * (1.0 + x)
        terms.append(log_comb + k * np.log(p) + (n - k) * np.log1p(-p) + math.log(0.5 * w))
    t = np.stack(terms, axis=0)
    m = t.max(axis=0)
    return m + np.log(np.exp(t - m).sum(axis=0))


if __name__ == "__main__":
    key = jax.random.PRNGKey(0)
    k1, k2, k3 = jax.random.split(key, 3)

    # Parameter init exactly as the module's __init__: zeros(len(Variation))
    means_pre_sigmoid_v = jnp.zeros((NUM_VARIATION_TYPES,), jnp.float32)

    # small primary batch + a larger one exercising the multi-tile (even-step) grid path
    for B in (8, 4096):
        kk1 = jax.random.fold_in(k1, B)
        kk2 = jax.random.fold_in(k2, B)
        kk3 = jax.random.fold_in(k3, B)
        ref_counts_b = jax.random.randint(kk1, (B,), 5, 60).astype(jnp.float32)
        alt_counts_b = jax.random.randint(kk2, (B,), 0, 4).astype(jnp.float32)
        var_types_b = jax.random.randint(kk3, (B,), 0, NUM_VARIATION_TYPES).astype(jnp.int32)

        out = normal_seq_error_spectrum(means_pre_sigmoid_v, ref_counts_b,
                                        alt_counts_b, var_types_b, MAX_MEAN)
        out = jax.block_until_ready(out)

        ref_out = _reference_forward_np(np.asarray(means_pre_sigmoid_v),
                                        np.asarray(ref_counts_b),
                                        np.asarray(alt_counts_b),
                                        np.asarray(var_types_b), MAX_MEAN)

        out_np = np.asarray(out)
        assert out.shape == (B,) and out.dtype == jnp.float32
        assert np.all(np.isfinite(out_np))
        np.testing.assert_allclose(out_np, ref_out, rtol=2e-3, atol=2e-3)

    print("KERNEL_OK")
</pallas_src>

<mosaic_0001>
module attributes {stable_mosaic.version = 11 : i64} {
  func.func @_nses_kernel(%arg0: i32, %arg1: memref<8x128xf32, #tpu.memory_space<vmem>>, %arg2: memref<8x128xf32, #tpu.memory_space<vmem>>, %arg3: memref<8x128xf32, #tpu.memory_space<vmem>>, %arg4: memref<8x128xf32, #tpu.memory_space<vmem>>, %arg5: memref<8x128xf32, #tpu.memory_space<vmem>>) attributes {dimension_semantics = [#tpu.dimension_semantics<parallel>], iteration_bounds = array<i64: 1>, scalar_prefetch = 0 : i64, scratch_operands = 0 : i64, tpu.core_type = #tpu.core_type<tc>, window_params = [{transform_indices = @transform_0, window_bounds = array<i64: 8, 128>}, {transform_indices = @transform_1, window_bounds = array<i64: 8, 128>}, {transform_indices = @transform_2, window_bounds = array<i64: 8, 128>}, {transform_indices = @transform_3, window_bounds = array<i64: 8, 128>}, {transform_indices = @transform_4, window_bounds = array<i64: 8, 128>}]} {
    %c0 = arith.constant 0 : index
    %c0_0 = arith.constant 0 : index
    %0 = vector.load %arg2[%c0, %c0_0] : memref<8x128xf32, #tpu.memory_space<vmem>>, vector<8x128xf32>
    %c0_1 = arith.constant 0 : index
    %c0_2 = arith.constant 0 : index
    %1 = vector.load %arg1[%c0_1, %c0_2] : memref<8x128xf32, #tpu.memory_space<vmem>>, vector<8x128xf32>
    %2 = arith.addf %0, %1 : vector<8x128xf32>
    %c0_3 = arith.constant 0 : index
    %c0_4 = arith.constant 0 : index
    %3 = vector.load %arg3[%c0_3, %c0_4] : memref<8x128xf32, #tpu.memory_space<vmem>>, vector<8x128xf32>
    %c0_5 = arith.constant 0 : index
    %c0_6 = arith.constant 0 : index
    %4 = vector.load %arg4[%c0_5, %c0_6] : memref<8x128xf32, #tpu.memory_space<vmem>>, vector<8x128xf32>
    %cst = arith.constant 1.000000e+00 : f32
    %5 = vector.broadcast %cst : f32 to vector<8x128xf32>
    %6 = arith.addf %2, %5 : vector<8x128xf32>
    %cst_7 = arith.constant 1.000000e+00 : f32
    %7 = vector.broadcast %cst_7 : f32 to vector<8x128xf32>
    %8 = arith.addf %6, %7 : vector<8x128xf32>
    %cst_8 = arith.constant 2.000000e+00 : f32
    %9 = vector.broadcast %cst_8 : f32 to vector<8x128xf32>
    %10 = arith.addf %6, %9 : vector<8x128xf32>
    %cst_9 = arith.constant 3.000000e+00 : f32
    %11 = vector.broadcast %cst_9 : f32 to vector<8x128xf32>
    %12 = arith.addf %6, %11 : vector<8x128xf32>
    %cst_10 = arith.constant 4.000000e+00 : f32
    %13 = vector.broadcast %cst_10 : f32 to vector<8x128xf32>
    %14 = arith.addf %6, %13 : vector<8x128xf32>
    %15 = arith.mulf %6, %8 : vector<8x128xf32>
    %16 = arith.mulf %10, %12 : vector<8x128xf32>
    %17 = arith.mulf %15, %16 : vector<8x128xf32>
    %18 = tpu.reciprocal %14 {approx = true} : vector<8x128xf32> -> vector<8x128xf32>
    %19 = arith.mulf %18, %18 : vector<8x128xf32>
    %cst_11 = arith.constant 7.93650805E-4 : f32
    %20 = vector.broadcast %cst_11 : f32 to vector<8x128xf32>
    %21 = arith.mulf %19, %20 : vector<8x128xf32>
    %cst_12 = arith.constant 0.00277777785 : f32
    %22 = vector.broadcast %cst_12 : f32 to vector<8x128xf32>
    %23 = arith.subf %22, %21 : vector<8x128xf32>
    %24 = arith.mulf %19, %23 : vector<8x128xf32>
    %cst_13 = arith.constant 0.0833333358 : f32
    %25 = vector.broadcast %cst_13 : f32 to vector<8x128xf32>
    %26 = arith.subf %25, %24 : vector<8x128xf32>
    %27 = arith.mulf %18, %26 : vector<8x128xf32>
    %cst_14 = arith.constant 5.000000e-01 : f32
    %28 = vector.broadcast %cst_14 : f32 to vector<8x128xf32>
    %29 = arith.subf %14, %28 : vector<8x128xf32>
    %30 = math.log %14 : vector<8x128xf32>
    %31 = arith.mulf %29, %30 : vector<8x128xf32>
    %32 = arith.subf %31, %14 : vector<8x128xf32>
    %33 = arith.addf %32, %27 : vector<8x128xf32>
    %cst_15 = arith.constant 1.000000e+00 : f32
    %34 = vector.broadcast %cst_15 : f32 to vector<8x128xf32>
    %35 = arith.addf %0, %34 : vector<8x128xf32>
    %cst_16 = arith.constant 1.000000e+00 : f32
    %36 = vector.broadcast %cst_16 : f32 to vector<8x128xf32>
    %37 = arith.addf %35, %36 : vector<8x128xf32>
    %cst_17 = arith.constant 2.000000e+00 : f32
    %38 = vector.broadcast %cst_17 : f32 to vector<8x128xf32>
    %39 = arith.addf %35, %38 : vector<8x128xf32>
    %cst_18 = arith.constant 3.000000e+00 : f32
    %40 = vector.broadcast %cst_18 : f32 to vector<8x128xf32>
    %41 = arith.addf %35, %40 : vector<8x128xf32>
    %cst_19 = arith.constant 4.000000e+00 : f32
    %42 = vector.broadcast %cst_19 : f32 to vector<8x128xf32>
    %43 = arith.addf %35, %42 : vector<8x128xf32>
    %44 = arith.mulf %35, %37 : vector<8x128xf32>
    %45 = arith.mulf %39, %41 : vector<8x128xf32>
    %46 = arith.mulf %44, %45 : vector<8x128xf32>
    %47 = tpu.reciprocal %43 {approx = true} : vector<8x128xf32> -> vector<8x128xf32>
    %48 = arith.mulf %47, %47 : vector<8x128xf32>
    %cst_20 = arith.constant 7.93650805E-4 : f32
    %49 = vector.broadcast %cst_20 : f32 to vector<8x128xf32>
    %50 = arith.mulf %48, %49 : vector<8x128xf32>
    %cst_21 = arith.constant 0.00277777785 : f32
    %51 = vector.broadcast %cst_21 : f32 to vector<8x128xf32>
    %52 = arith.subf %51, %50 : vector<8x128xf32>
    %53 = arith.mulf %48, %52 : vector<8x128xf32>
    %cst_22 = arith.constant 0.0833333358 : f32
    %54 = vector.broadcast %cst_22 : f32 to vector<8x128xf32>
    %55 = arith.subf %54, %53 : vector<8x128xf32>
    %56 = arith.mulf %47, %55 : vector<8x128xf32>
    %cst_23 = arith.constant 5.000000e-01 : f32
    %57 = vector.broadcast %cst_23 : f32 to vector<8x128xf32>
    %58 = arith.subf %43, %57 : vector<8x128xf32>
    %59 = math.log %43 : vector<8x128xf32>
    %60 = arith.mulf %58, %59 : vector<8x128xf32>
    %61 = arith.subf %60, %43 : vector<8x128xf32>
    %62 = arith.addf %61, %56 : vector<8x128xf32>
    %cst_24 = arith.constant 1.000000e+00 : f32
    %63 = vector.broadcast %cst_24 : f32 to vector<8x128xf32>
    %64 = arith.addf %1, %63 : vector<8x128xf32>
    %cst_25 = arith.constant 1.000000e+00 : f32
    %65 = vector.broadcast %cst_25 : f32 to vector<8x128xf32>
    %66 = arith.addf %64, %65 : vector<8x128xf32>
    %cst_26 = arith.constant 2.000000e+00 : f32
    %67 = vector.broadcast %cst_26 : f32 to vector<8x128xf32>
    %68 = arith.addf %64, %67 : vector<8x128xf32>
    %cst_27 = arith.constant 3.000000e+00 : f32
    %69 = vector.broadcast %cst_27 : f32 to vector<8x128xf32>
    %70 = arith.addf %64, %69 : vector<8x128xf32>
    %cst_28 = arith.constant 4.000000e+00 : f32
    %71 = vector.broadcast %cst_28 : f32 to vector<8x128xf32>
    %72 = arith.addf %64, %71 : vector<8x128xf32>
    %73 = arith.mulf %64, %66 : vector<8x128xf32>
    %74 = arith.mulf %68, %70 : vector<8x128xf32>
    %75 = arith.mulf %73, %74 : vector<8x128xf32>
    %76 = tpu.reciprocal %72 {approx = true} : vector<8x128xf32> -> vector<8x128xf32>
    %77 = arith.mulf %76, %76 : vector<8x128xf32>
    %cst_29 = arith.constant 7.93650805E-4 : f32
    %78 = vector.broadcast %cst_29 : f32 to vector<8x128xf32>
    %79 = arith.mulf %77, %78 : vector<8x128xf32>
    %cst_30 = arith.constant 0.00277777785 : f32
    %80 = vector.broadcast %cst_30 : f32 to vector<8x128xf32>
    %81 = arith.subf %80, %79 : vector<8x128xf32>
    %82 = arith.mulf %77, %81 : vector<8x128xf32>
    %cst_31 = arith.constant 0.0833333358 : f32
    %83 = vector.broadcast %cst_31 : f32 to vector<8x128xf32>
    %84 = arith.subf %83, %82 : vector<8x128xf32>
    %85 = arith.mulf %76, %84 : vector<8x128xf32>
    %cst_32 = arith.constant 5.000000e-01 : f32
    %86 = vector.broadcast %cst_32 : f32 to vector<8x128xf32>
    %87 = arith.subf %72, %86 : vector<8x128xf32>
    %88 = math.log %72 : vector<8x128xf32>
    %89 = arith.mulf %87, %88 : vector<8x128xf32>
    %90 = arith.subf %89, %72 : vector<8x128xf32>
    %91 = arith.addf %90, %85 : vector<8x128xf32>
    %92 = arith.subf %33, %62 : vector<8x128xf32>
    %93 = arith.subf %92, %91 : vector<8x128xf32>
    %cst_33 = arith.constant 0.918938517 : f32
    %94 = vector.broadcast %cst_33 : f32 to vector<8x128xf32>
    %95 = arith.subf %93, %94 : vector<8x128xf32>
    %96 = arith.divf %75, %17 : vector<8x128xf32>
    %97 = arith.mulf %46, %96 : vector<8x128xf32>
    %98 = math.log %97 : vector<8x128xf32>
    %99 = arith.addf %95, %98 : vector<8x128xf32>
    %100 = arith.mulf %1, %3 : vector<8x128xf32>
    %cst_34 = arith.constant 5.000000e-01 : f32
    %101 = vector.broadcast %cst_34 : f32 to vector<8x128xf32>
    %102 = arith.mulf %101, %100 : vector<8x128xf32>
    %103 = arith.mulf %102, %3 : vector<8x128xf32>
    %104 = arith.addf %100, %103 : vector<8x128xf32>
    %105 = arith.mulf %0, %4 : vector<8x128xf32>
    %106 = arith.addf %99, %105 : vector<8x128xf32>
    %107 = arith.subf %106, %104 : vector<8x128xf32>
    %cst_35 = arith.constant 0.000000e+00 : f32
    %108 = vector.broadcast %cst_35 : f32 to vector<8x128xf32>
    %cst_36 = arith.constant -4.29943466 : f32
    %109 = vector.broadcast %cst_36 : f32 to vector<8x128xf32>
    %110 = arith.addf %104, %109 : vector<8x128xf32>
    %cst_37 = arith.constant -5.24013662 : f32
    %111 = vector.broadcast %cst_37 : f32 to vector<8x128xf32>
    %112 = arith.mulf %0, %111 : vector<8x128xf32>
    %113 = arith.addf %110, %112 : vector<8x128xf32>
    %cst_38 = arith.constant 0.00529953232 : f32
    %114 = vector.broadcast %cst_38 : f32 to vector<8x128xf32>
    %115 = arith.mulf %100, %114 : vector<8x128xf32>
    %116 = arith.subf %113, %115 : vector<8x128xf32>
    %cst_39 = arith.constant 2.80850454E-5 : f32
    %117 = vector.broadcast %cst_39 : f32 to vector<8x128xf32>
    %118 = arith.mulf %103, %117 : vector<8x128xf32>
    %119 = arith.subf %116, %118 : vector<8x128xf32>
    %120 = math.exp %119 : vector<8x128xf32>
    %121 = arith.addf %108, %120 : vector<8x128xf32>
    %cst_40 = arith.constant -3.46968722 : f32
    %122 = vector.broadcast %cst_40 : f32 to vector<8x128xf32>
    %123 = arith.addf %104, %122 : vector<8x128xf32>
    %cst_41 = arith.constant -3.58587217 : f32
    %124 = vector.broadcast %cst_41 : f32 to vector<8x128xf32>
    %125 = arith.mulf %0, %124 : vector<8x128xf32>
    %126 = arith.addf %123, %125 : vector<8x128xf32>
    %cst_42 = arith.constant 0.0277124885 : f32
    %127 = vector.broadcast %cst_42 : f32 to vector<8x128xf32>
    %128 = arith.mulf %100, %127 : vector<8x128xf32>
    %129 = arith.subf %126, %128 : vector<8x128xf32>
    %cst_43 = arith.constant 7.67982041E-4 : f32
    %130 = vector.broadcast %cst_43 : f32 to vector<8x128xf32>
    %131 = arith.mulf %103, %130 : vector<8x128xf32>
    %132 = arith.subf %129, %131 : vector<8x128xf32>
    %133 = math.exp %132 : vector<8x128xf32>
    %134 = arith.addf %121, %133 : vector<8x128xf32>
    %cst_44 = arith.constant -3.04535842 : f32
    %135 = vector.broadcast %cst_44 : f32 to vector<8x128xf32>
    %136 = arith.addf %104, %135 : vector<8x128xf32>
    %cst_45 = arith.constant -2.70031428 : f32
    %137 = vector.broadcast %cst_45 : f32 to vector<8x128xf32>
    %138 = arith.mulf %0, %137 : vector<8x128xf32>
    %139 = arith.addf %136, %138 : vector<8x128xf32>
    %cst_46 = arith.constant 0.0671843961 : f32
    %140 = vector.broadcast %cst_46 : f32 to vector<8x128xf32>
    %141 = arith.mulf %100, %140 : vector<8x128xf32>
    %142 = arith.subf %139, %141 : vector<8x128xf32>
    %cst_47 = arith.constant 0.00451374333 : f32
    %143 = vector.broadcast %cst_47 : f32 to vector<8x128xf32>
    %144 = arith.mulf %103, %143 : vector<8x128xf32>
    %145 = arith.subf %142, %144 : vector<8x128xf32>
    %146 = math.exp %145 : vector<8x128xf32>
    %147 = arith.addf %134, %146 : vector<8x128xf32>
    %cst_48 = arith.constant -2.77556133 : f32
    %148 = vector.broadcast %cst_48 : f32 to vector<8x128xf32>
    %149 = arith.addf %104, %148 : vector<8x128xf32>
    %cst_49 = arith.constant -2.10129619 : f32
    %150 = vector.broadcast %cst_49 : f32 to vector<8x128xf32>
    %151 = arith.mulf %0, %150 : vector<8x128xf32>
    %152 = arith.addf %149, %151 : vector<8x128xf32>
    %cst_50 = arith.constant 0.122297794 : f32
    %153 = vector.broadcast %cst_50 : f32 to vector<8x128xf32>
    %154 = arith.mulf %100, %153 : vector<8x128xf32>
    %155 = arith.subf %152, %154 : vector<8x128xf32>
    %cst_51 = arith.constant 0.0149567509 : f32
    %156 = vector.broadcast %cst_51 : f32 to vector<8x128xf32>
    %157 = arith.mulf %103, %156 : vector<8x128xf32>
    %158 = arith.subf %155, %157 : vector<8x128xf32>
    %159 = math.exp %158 : vector<8x128xf32>
    %160 = arith.addf %147, %159 : vector<8x128xf32>
    %cst_52 = arith.constant -2.59296417 : f32
    %161 = vector.broadcast %cst_52 : f32 to vector<8x128xf32>
    %162 = arith.addf %104, %161 : vector<8x128xf32>
    %cst_53 = arith.constant -1.65515792 : f32
    %163 = vector.broadcast %cst_53 : f32 to vector<8x128xf32>
    %164 = arith.mulf %0, %163 : vector<8x128xf32>
    %165 = arith.addf %162, %164 : vector<8x128xf32>
    %cst_54 = arith.constant 0.191061884 : f32
    %166 = vector.broadcast %cst_54 : f32 to vector<8x128xf32>
    %167 = arith.mulf %100, %166 : vector<8x128xf32>
    %168 = arith.subf %165, %167 : vector<8x128xf32>
    %cst_55 = arith.constant 0.0365046412 : f32
    %169 = vector.broadcast %cst_55 : f32 to vector<8x128xf32>
    %170 = arith.mulf %103, %169 : vector<8x128xf32>
    %171 = arith.subf %168, %170 : vector<8x128xf32>
    %172 = math.exp %171 : vector<8x128xf32>
    %173 = arith.addf %160, %172 : vector<8x128xf32>
    %cst_56 = arith.constant -2.47007799 : f32
    %174 = vector.broadcast %cst_56 : f32 to vector<8x128xf32>
    %175 = arith.addf %104, %174 : vector<8x128xf32>
    %cst_57 = arith.constant -1.3056674 : f32
    %176 = vector.broadcast %cst_57 : f32 to vector<8x128xf32>
    %177 = arith.mulf %0, %176 : vector<8x128xf32>
    %178 = arith.addf %175, %177 : vector<8x128xf32>
    %cst_58 = arith.constant 0.270991623 : f32
    %179 = vector.broadcast %cst_58 : f32 to vector<8x128xf32>
    %180 = arith.mulf %100, %179 : vector<8x128xf32>
    %181 = arith.subf %178, %180 : vector<8x128xf32>
    %cst_59 = arith.constant 0.0734364539 : f32
    %182 = vector.broadcast %cst_59 : f32 to vector<8x128xf32>
    %183 = arith.mulf %103, %182 : vector<8x128xf32>
    %184 = arith.subf %181, %183 : vector<8x128xf32>
    %185 = math.exp %184 : vector<8x128xf32>
    %186 = arith.addf %173, %185 : vector<8x128xf32>
    %cst_60 = arith.constant -2.39358568 : f32
    %187 = vector.broadcast %cst_60 : f32 to vector<8x128xf32>
    %188 = arith.addf %104, %187 : vector<8x128xf32>
    %cst_61 = arith.constant -1.02388084 : f32
    %189 = vector.broadcast %cst_61 : f32 to vector<8x128xf32>
    %190 = arith.mulf %0, %189 : vector<8x128xf32>
    %191 = arith.addf %188, %190 : vector<8x128xf32>
    %cst_62 = arith.constant 0.359198213 : f32
    %192 = vector.broadcast %cst_62 : f32 to vector<8x128xf32>
    %193 = arith.mulf %100, %192 : vector<8x128xf32>
    %194 = arith.subf %191, %193 : vector<8x128xf32>
    %cst_63 = arith.constant 0.129023358 : f32
    %195 = vector.broadcast %cst_63 : f32 to vector<8x128xf32>
    %196 = arith.mulf %103, %195 : vector<8x128xf32>
    %197 = arith.subf %194, %196 : vector<8x128xf32>
    %198 = math.exp %197 : vector<8x128xf32>
    %199 = arith.addf %186, %198 : vector<8x128xf32>
    %cst_64 = arith.constant -2.35677409 : f32
    %200 = vector.broadcast %cst_64 : f32 to vector<8x128xf32>
    %201 = arith.addf %104, %200 : vector<8x128xf32>
    %cst_65 = arith.constant -0.792981326 : f32
    %202 = vector.broadcast %cst_65 : f32 to vector<8x128xf32>
    %203 = arith.mulf %0, %202 : vector<8x128xf32>
    %204 = arith.addf %201, %203 : vector<8x128xf32>
    %cst_66 = arith.constant 0.452493757 : f32
    %205 = vector.broadcast %cst_66 : f32 to vector<8x128xf32>
    %206 = arith.mulf %100, %205 : vector<8x128xf32>
    %207 = arith.subf %204, %206 : vector<8x128xf32>
    %cst_67 = arith.constant 0.204750583 : f32
    %208 = vector.broadcast %cst_67 : f32 to vector<8x128xf32>
    %209 = arith.mulf %103, %208 : vector<8x128xf32>
    %210 = arith.subf %207, %209 : vector<8x128xf32>
    %211 = math.exp %210 : vector<8x128xf32>
    %212 = arith.addf %199, %211 : vector<8x128xf32>
    %cst_68 = arith.constant -2.35677409 : f32
    %213 = vector.broadcast %cst_68 : f32 to vector<8x128xf32>
    %214 = arith.addf %104, %213 : vector<8x128xf32>
    %cst_69 = arith.constant -0.602381408 : f32
    %215 = vector.broadcast %cst_69 : f32 to vector<8x128xf32>
    %216 = arith.mulf %0, %215 : vector<8x128xf32>
    %217 = arith.addf %214, %216 : vector<8x128xf32>
    %cst_70 = arith.constant 0.547506273 : f32
    %218 = vector.broadcast %cst_70 : f32 to vector<8x128xf32>
    %219 = arith.mulf %100, %218 : vector<8x128xf32>
    %220 = arith.subf %217, %219 : vector<8x128xf32>
    %cst_71 = arith.constant 0.299763113 : f32
    %221 = vector.broadcast %cst_71 : f32 to vector<8x128xf32>
    %222 = arith.mulf %103, %221 : vector<8x128xf32>
    %223 = arith.subf %220, %222 : vector<8x128xf32>
    %224 = math.exp %223 : vector<8x128xf32>
    %225 = arith.addf %212, %224 : vector<8x128xf32>
    %cst_72 = arith.constant -2.39358568 : f32
    %226 = vector.broadcast %cst_72 : f32 to vector<8x128xf32>
    %227 = arith.addf %104, %226 : vector<8x128xf32>
    %cst_73 = arith.constant -0.4450351 : f32
    %228 = vector.broadcast %cst_73 : f32 to vector<8x128xf32>
    %229 = arith.mulf %0, %228 : vector<8x128xf32>
    %230 = arith.addf %227, %229 : vector<8x128xf32>
    %cst_74 = arith.constant 0.640801787 : f32
    %231 = vector.broadcast %cst_74 : f32 to vector<8x128xf32>
    %232 = arith.mulf %100, %231 : vector<8x128xf32>
    %233 = arith.subf %230, %232 : vector<8x128xf32>
    %cst_75 = arith.constant 0.410626918 : f32
    %234 = vector.broadcast %cst_75 : f32 to vector<8x128xf32>
    %235 = arith.mulf %103, %234 : vector<8x128xf32>
    %236 = arith.subf %233, %235 : vector<8x128xf32>
    %237 = math.exp %236 : vector<8x128xf32>
    %238 = arith.addf %225, %237 : vector<8x128xf32>
    %cst_76 = arith.constant -2.47007799 : f32
    %239 = vector.broadcast %cst_76 : f32 to vector<8x128xf32>
    %240 = arith.addf %104, %239 : vector<8x128xf32>
    %cst_77 = arith.constant -0.31607005 : f32
    %241 = vector.broadcast %cst_77 : f32 to vector<8x128xf32>
    %242 = arith.mulf %0, %241 : vector<8x128xf32>
    %243 = arith.addf %240, %242 : vector<8x128xf32>
    %cst_78 = arith.constant 0.729008376 : f32
    %244 = vector.broadcast %cst_78 : f32 to vector<8x128xf32>
    %245 = arith.mulf %100, %244 : vector<8x128xf32>
    %246 = arith.subf %243, %245 : vector<8x128xf32>
    %cst_79 = arith.constant 0.531453252 : f32
    %247 = vector.broadcast %cst_79 : f32 to vector<8x128xf32>
    %248 = arith.mulf %103, %247 : vector<8x128xf32>
    %249 = arith.subf %246, %248 : vector<8x128xf32>
    %250 = math.exp %249 : vector<8x128xf32>
    %251 = arith.addf %238, %250 : vector<8x128xf32>
    %cst_80 = arith.constant -2.59296417 : f32
    %252 = vector.broadcast %cst_80 : f32 to vector<8x128xf32>
    %253 = arith.addf %104, %252 : vector<8x128xf32>
    %cst_81 = arith.constant -0.212032855 : f32
    %254 = vector.broadcast %cst_81 : f32 to vector<8x128xf32>
    %255 = arith.mulf %0, %254 : vector<8x128xf32>
    %256 = arith.addf %253, %255 : vector<8x128xf32>
    %cst_82 = arith.constant 0.808938145 : f32
    %257 = vector.broadcast %cst_82 : f32 to vector<8x128xf32>
    %258 = arith.mulf %100, %257 : vector<8x128xf32>
    %259 = arith.subf %256, %258 : vector<8x128xf32>
    %cst_83 = arith.constant 0.654380857 : f32
    %260 = vector.broadcast %cst_83 : f32 to vector<8x128xf32>
    %261 = arith.mulf %103, %260 : vector<8x128xf32>
    %262 = arith.subf %259, %261 : vector<8x128xf32>
    %263 = math.exp %262 : vector<8x128xf32>
    %264 = arith.addf %251, %263 : vector<8x128xf32>
    %cst_84 = arith.constant -2.77556133 : f32
    %265 = vector.broadcast %cst_84 : f32 to vector<8x128xf32>
    %266 = arith.addf %104, %265 : vector<8x128xf32>
    %cst_85 = arith.constant -0.130447924 : f32
    %267 = vector.broadcast %cst_85 : f32 to vector<8x128xf32>
    %268 = arith.mulf %0, %267 : vector<8x128xf32>
    %269 = arith.addf %266, %268 : vector<8x128xf32>
    %cst_86 = arith.constant 0.877702176 : f32
    %270 = vector.broadcast %cst_86 : f32 to vector<8x128xf32>
    %271 = arith.mulf %100, %270 : vector<8x128xf32>
    %272 = arith.subf %269, %271 : vector<8x128xf32>
    %cst_87 = arith.constant 0.770361185 : f32
    %273 = vector.broadcast %cst_87 : f32 to vector<8x128xf32>
    %274 = arith.mulf %103, %273 : vector<8x128xf32>
    %275 = arith.subf %272, %274 : vector<8x128xf32>
    %276 = math.exp %275 : vector<8x128xf32>
    %277 = arith.addf %264, %276 : vector<8x128xf32>
    %cst_88 = arith.constant -3.04535842 : f32
    %278 = vector.broadcast %cst_88 : f32 to vector<8x128xf32>
    %279 = arith.addf %104, %278 : vector<8x128xf32>
    %cst_89 = arith.constant -0.0695477352 : f32
    %280 = vector.broadcast %cst_89 : f32 to vector<8x128xf32>
    %281 = arith.mulf %0, %280 : vector<8x128xf32>
    %282 = arith.addf %279, %281 : vector<8x128xf32>
    %cst_90 = arith.constant 0.932815611 : f32
    %283 = vector.broadcast %cst_90 : f32 to vector<8x128xf32>
    %284 = arith.mulf %100, %283 : vector<8x128xf32>
    %285 = arith.subf %282, %284 : vector<8x128xf32>
    %cst_91 = arith.constant 0.870144963 : f32
    %286 = vector.broadcast %cst_91 : f32 to vector<8x128xf32>
    %287 = arith.mulf %103, %286 : vector<8x128xf32>
    %288 = arith.subf %285, %287 : vector<8x128xf32>
    %289 = math.exp %288 : vector<8x128xf32>
    %290 = arith.addf %277, %289 : vector<8x128xf32>
    %cst_92 = arith.constant -3.46968722 : f32
    %291 = vector.broadcast %cst_92 : f32 to vector<8x128xf32>
    %292 = arith.addf %104, %291 : vector<8x128xf32>
    %cst_93 = arith.constant -0.0281037241 : f32
    %293 = vector.broadcast %cst_93 : f32 to vector<8x128xf32>
    %294 = arith.mulf %0, %293 : vector<8x128xf32>
    %295 = arith.addf %292, %294 : vector<8x128xf32>
    %cst_94 = arith.constant 0.972287535 : f32
    %296 = vector.broadcast %cst_94 : f32 to vector<8x128xf32>
    %297 = arith.mulf %100, %296 : vector<8x128xf32>
    %298 = arith.subf %295, %297 : vector<8x128xf32>
    %cst_95 = arith.constant 9.453430e-01 : f32
    %299 = vector.broadcast %cst_95 : f32 to vector<8x128xf32>
    %300 = arith.mulf %103, %299 : vector<8x128xf32>
    %301 = arith.subf %298, %300 : vector<8x128xf32>
    %302 = math.exp %301 : vector<8x128xf32>
    %303 = arith.addf %290, %302 : vector<8x128xf32>
    %cst_96 = arith.constant -4.29943466 : f32
    %304 = vector.broadcast %cst_96 : f32 to vector<8x128xf32>
    %305 = arith.addf %104, %304 : vector<8x128xf32>
    %cst_97 = arith.constant -0.00531362463 : f32
    %306 = vector.broadcast %cst_97 : f32 to vector<8x128xf32>
    %307 = arith.mulf %0, %306 : vector<8x128xf32>
    %308 = arith.addf %305, %307 : vector<8x128xf32>
    %cst_98 = arith.constant 0.994700491 : f32
    %309 = vector.broadcast %cst_98 : f32 to vector<8x128xf32>
    %310 = arith.mulf %100, %309 : vector<8x128xf32>
    %311 = arith.subf %308, %310 : vector<8x128xf32>
    %cst_99 = arith.constant 0.989428997 : f32
    %312 = vector.broadcast %cst_99 : f32 to vector<8x128xf32>
    %313 = arith.mulf %103, %312 : vector<8x128xf32>
    %314 = arith.subf %311, %313 : vector<8x128xf32>
    %315 = math.exp %314 : vector<8x128xf32>
    %316 = arith.addf %303, %315 : vector<8x128xf32>
    %317 = math.log %316 : vector<8x128xf32>
    %318 = arith.addf %107, %317 : vector<8x128xf32>
    %c0_100 = arith.constant 0 : index
    %c0_101 = arith.constant 0 : index
    %319 = vector.load %arg5[%c0_100, %c0_101] : memref<8x128xf32, #tpu.memory_space<vmem>>, vector<8x128xf32>
    tpu.vector_store %arg5[%c0_100, %c0_101], %318 {strides = array<i32>} : memref<8x128xf32, #tpu.memory_space<vmem>>, vector<8x128xf32>,
    return
  }
  func.func @transform_0(%arg0: i32) -> (i32, i32) {
    %c0_i32 = arith.constant 0 : i32
    %c0_i32_0 = arith.constant 0 : i32
    return %arg0, %c0_i32 : i32, i32
  }
  func.func @transform_1(%arg0: i32) -> (i32, i32) {
    %c0_i32 = arith.constant 0 : i32
    %c0_i32_0 = arith.constant 0 : i32
    return %arg0, %c0_i32 : i32, i32
  }
  func.func @transform_2(%arg0: i32) -> (i32, i32) {
    %c0_i32 = arith.constant 0 : i32
    %c0_i32_0 = arith.constant 0 : i32
    return %arg0, %c0_i32 : i32, i32
  }
  func.func @transform_3(%arg0: i32) -> (i32, i32) {
    %c0_i32 = arith.constant 0 : i32
    %c0_i32_0 = arith.constant 0 : i32
    return %arg0, %c0_i32 : i32, i32
  }
  func.func @transform_4(%arg0: i32) -> (i32, i32) {
    %c0_i32 = arith.constant 0 : i32
    %c0_i32_0 = arith.constant 0 : i32
    return %arg0, %c0_i32 : i32, i32
  }
}

</mosaic_0001>

<bundles_post_ra>
// kernel: tpu_custom_call.1
= control target key start
LH: loop header
LB: loop body
LE: loop exit
PB: predicated region body
PF: predicated region fallthrough
CT: control target
= control target key end

     0   :  { %9 = vsyncpa [#allocation3], 0  ;;  %s708_s0 = inlined_call_operand.hbm [shape: f32[8,128], index: 0, kind: input, shape index: {}]   ;;  %s709_s1 = inlined_call_operand.hbm [shape: f32[8,128], index: 1, kind: input, shape index: {}]   ;;  %s710_s2 = inlined_call_operand.hbm [shape: f32[8,128], index: 2, kind: input, shape index: {}]   ;;  %s711_s3 = inlined_call_operand.vmem [shape: f32[8,128], index: 3, kind: input, shape index: {}]   ;;  %s712_s4 = inlined_call_operand.hbm [shape: f32[8,128], index: 4, kind: output, shape index: {}]  }
   0x1   :  { %10 = vsyncpa [#allocation6], 0 }
   0x2   :  { %11 = vsyncpa [#allocation4], 0  ;;  %s461_s15 = smov [#allocation5]   ;;  %s462_s17 = smov [#allocation2]  }
   0x3   :  { %s28_s16 = sshll.u32 %s461_s15, 4  ;;  %s18_s18 = sshll.u32 %s462_s17, 4  ;;  %s29_s16 = int_to_ptr.vmem [resolvable:$true] %s28_s16  ;;  %s19_s18 = int_to_ptr.vmem [resolvable:$true] %s18_s18 }
   0x4   :  { %s367_s21 = scalar_lea.hbm %s709_s1, 128 }
   0x5   :  { %p368_p0 = scmp.ne.s32.totalorder %s709_s1, %s367_s21  ;;  %p371_p1 = scmp.lt.u32.totalorder %s367_s21, %s709_s1 }
   0x7   :  { %p373_p2 = pnand %p371_p1, %p368_p0 }
   0x9   :  { %376 = shalt.err (!%p373_p2)
}
   0xa   :  { %s377_s26 = scalar_lea.vmem %s29_s16, 128  ;;  %p382_p4 = scmp.lt.s32.totalorder %s29_s16, %s29_s16 }
   0xb   :  { %p378_p3 = scmp.ne.s32.totalorder %s29_s16, %s377_s26  ;;  %p383_p5 = scmp.lt.s32.totalorder %s377_s26, %s377_s26 }
   0xd   :  { %p384_p6 = por %p383_p5, %p382_p4 }
   0xf   :  { %p385_p7 = pnand %p384_p6, %p378_p3 }
  0x11   :  { %388 = shalt.err (!%p385_p7)
}
  0x12   :  { %31 = dma.hbm_to_vmem [thread:$0]  %s709_s1, 128, %s29_s16, [#allocation6]  }
  0x13   :  { %s389_s5 = scalar_lea.hbm %s708_s0, 128 }
  0x14   :  { %p390_p8 = scmp.ne.s32.totalorder %s708_s0, %s389_s5  ;;  %p393_p9 = scmp.lt.u32.totalorder %s389_s5, %s708_s0 }
  0x16   :  { %p395_p10 = pnand %p393_p9, %p390_p8 }
  0x18   :  { %398 = shalt.err (!%p395_p10)
}
  0x19   :  { %s399_s10 = scalar_lea.vmem %s19_s18, 128  ;;  %p404_p12 = scmp.lt.s32.totalorder %s19_s18, %s19_s18 }
  0x1a   :  { %p400_p11 = scmp.ne.s32.totalorder %s19_s18, %s399_s10  ;;  %p405_p13 = scmp.lt.s32.totalorder %s399_s10, %s399_s10 }
  0x1c   :  { %p406_p0 = por %p405_p13, %p404_p12 }
  0x1e   :  { %p407_p1 = pnand %p406_p0, %p400_p11 }
  0x20   :  { %410 = shalt.err (!%p407_p1)
}
  0x21   :  { %21 = dma.hbm_to_vmem [thread:$0]  %s708_s0, 128, %s19_s18, [#allocation3]  }
  0x22   :  { %s463_s12 = smov [#allocation7]   ;;  %s411_s16 = scalar_lea.hbm %s710_s2, 128 }
  0x23   :  { %s38_s13 = sshll.u32 %s463_s12, 4  ;;  %p412_p2 = scmp.ne.s32.totalorder %s710_s2, %s411_s16  ;;  %s39_s13 = int_to_ptr.vmem [resolvable:$true] %s38_s13 }
  0x24   :  { %p415_p3 = scmp.lt.u32.totalorder %s411_s16, %s710_s2 }
  0x26   :  { %p417_p4 = pnand %p415_p3, %p412_p2 }
  0x28   :  { %420 = shalt.err (!%p417_p4)
}
  0x29   :  { %s421_s22 = scalar_lea.vmem %s39_s13, 128  ;;  %p426_p6 = scmp.lt.s32.totalorder %s39_s13, %s39_s13 }
  0x2a   :  { %p422_p5 = scmp.ne.s32.totalorder %s39_s13, %s421_s22  ;;  %p427_p7 = scmp.lt.s32.totalorder %s421_s22, %s421_s22 }
  0x2c   :  { %p428_p8 = por %p427_p7, %p426_p6 }
  0x2e   :  { %p429_p9 = pnand %p428_p8, %p422_p5 }
  0x30   :  { %432 = shalt.err (!%p429_p9)
}
  0x31   :  { %41 = dma.hbm_to_vmem [thread:$0]  %s710_s2, 128, %s39_s13, [#allocation6]  }
  0x32   :  { %455 = dma.done.wait [#allocation3], 128  }
  0x33   :  { %456 = vsyncadd [#allocation3], 4294967168 }
  0x34   :  { %457 = dma.done.wait [#allocation6], 256  }
  0x35   :  { %458 = vsyncadd [#allocation6], 4294967040  ;;  %v526_v0 = vld [vmem:[#allocation5] sm:$0xff]  ;;  %v54_v1 = vld [vmem:[#allocation2] sm:$0xff]  ;;  %s464_s24 = smov [#allocation8]  }
  0x36   :  { %v55_v2 = vadd.f32 %v54_v1, %v526_v0  ;;  %v56_v3 = vld [vmem:[#allocation7] sm:$0xff]  ;;  %v79_v4 = vadd.f32 1.0, %v526_v0  ;;  %v100_v12 = vadd.f32 1.0, %v54_v1  ;;  %v138_v18 = vmul.f32 -5.2401366, %v526_v0  ;;  %s299_s25 = sshll.u32 %s464_s24, 4  ;;  %s300_s25 = int_to_ptr.vmem [resolvable:$true] %s299_s25 }
  0x37   :  { %v532_v7 = vmul.f32 %v56_v3, %v54_v1  ;;  %v148_v24 = vmul.f32 -3.5858722, %v526_v0  ;;  %v158_v25 = vmul.f32 -2.7003143, %v526_v0  ;;  %v168_v32 = vmul.f32 -2.1012962, %v526_v0  ;;  %p438_p11 = scmp.lt.s32.totalorder %s300_s25, %s300_s25 }
  0x38   :  { %v58_v5 = vadd.f32 1.0, %v55_v2  ;;  %v530_v6 = vadd.f32 4.0, %v79_v4  ;;  %v80_v15 = vadd.f32 1.0, %v79_v4  ;;  %v540_v17 = vadd.f32 4.0, %v100_v12  ;;  %s433_s26 = scalar_lea.vmem %s300_s25, 128 }
  0x39   :  { %v131_v16 = vmul.f32 0.5, %v532_v7  ;;  %v81_v19 = vadd.f32 2.0, %v79_v4  ;;  %v82_v20 = vadd.f32 3.0, %v79_v4  ;;  %v101_v22 = vadd.f32 1.0, %v100_v12  ;;  %p434_p10 = scmp.ne.s32.totalorder %s300_s25, %s433_s26  ;;  %p439_p12 = scmp.lt.s32.totalorder %s433_s26, %s433_s26 }
  0x3a   :  { %v59_v8 = vadd.f32 1.0, %v58_v5  ;;  %v60_v9 = vadd.f32 2.0, %v58_v5  ;;  %v61_v10 = vadd.f32 3.0, %v58_v5  ;;  %v534_v11 = vadd.f32 4.0, %v58_v5 }
  0x3b   :  { %317 = vrcp.f32 %v530_v6  ;;  %v544_v21 = vmul.f32 %v131_v16, %v56_v3  ;;  %v102_v23 = vadd.f32 2.0, %v100_v12  ;;  %v84_v27 = vmul.f32 %v80_v15, %v79_v4  ;;  %p440_p13 = por %p439_p12, %p438_p11 }
  0x3c   :  { %319 = vrcp.f32 %v534_v11  ;;  %v63_v13 = vmul.f32 %v59_v8, %v58_v5  ;;  %v64_v14 = vmul.f32 %v61_v10, %v60_v9  ;;  %v103_v28 = vadd.f32 3.0, %v100_v12 }
  0x3d   :  { %321 = vlog2.f32 %v534_v11  ;;  %v550_v29 = vadd.f32 %v544_v21, %v532_v7  ;;  %v140_v30 = vmul.f32 0.0052995323, %v532_v7  ;;  %v150_v31 = vmul.f32 0.027712489, %v532_v7  ;;  %p441_p0 = pnand %p440_p13, %p434_p10 }
  0x3e   :  { %323 = vlog2.f32 %v530_v6  ;;  %v65_v26 = vmul.f32 %v64_v14, %v63_v13  ;;  %v85_v33 = vmul.f32 %v82_v20, %v81_v19  ;;  %v310_v38 = vadd.f32 -0.5, %v530_v6 }
  0x3f   :  { %325 = vrcp.f32 %v540_v17  ;;  %v557_v34 = vadd.f32 -4.2994347, %v550_v29  ;;  %v560_v35 = vadd.f32 -3.4696872, %v550_v29  ;;  %v563_v36 = vadd.f32 -3.0453584, %v550_v29 }
  0x40   :  { %327 = vlog2.f32 %v540_v17  ;;  %v160_v39 = vmul.f32 0.067184396, %v532_v7  ;;  %v571_v40 = vadd.f32 -2.7755613, %v550_v29  ;;  %v142_v43 = vmul.f32 2.8085045e-05, %v544_v21 }
  0x41   :  { %329 = vrcp.f32 %v65_v26  ;;  %v139_v42 = vadd.f32 %v138_v18, %v557_v34  ;;  %v149_v44 = vadd.f32 %v148_v24, %v560_v35  ;;  %v152_v47 = vmul.f32 0.00076798204, %v544_v21 }
  0x42   :  { %v159_v48 = vadd.f32 %v158_v25, %v563_v36  ;;  %v170_v49 = vmul.f32 0.12229779, %v532_v7  ;;  %v169_v53 = vadd.f32 %v168_v32, %v571_v40  ;;  %v309_v54 = vadd.f32 -0.5, %v534_v11 }
  0x43   :  { %v141_v51 = vsub.f32 %v139_v42, %v140_v30  ;;  %v151_v52 = vsub.f32 %v149_v44, %v150_v31  ;;  %v587_v55 = vmul.f32 %v85_v33, %v84_v27  ;;  %v590_v56 = vadd.f32 -2.5929642, %v550_v29 }
  0x44   :  { %v178_v57 = vmul.f32 -1.6551579, %v526_v0  ;;  %v105_v60 = vmul.f32 %v101_v22, %v100_v12  ;;  %v106_v61 = vmul.f32 %v103_v28, %v102_v23  ;;  %v161_v2 = vsub.f32 %v159_v48, %v160_v39 }
  0x45   :  { %v565_v37 = vpop.eup %317  ;;  %v143_v62 = vsub.f32 %v141_v51, %v142_v43  ;;  %v153_v1 = vsub.f32 %v151_v52, %v152_v47  ;;  %v162_v3 = vmul.f32 0.0045137433, %v544_v21  ;;  %v595_v5 = vadd.f32 -0.5, %v540_v17 }
  0x46   :  { %v573_v41 = vpop.eup %319  ;;  %v88_v46 = vmul.f32 %v565_v37, %v565_v37  ;;  %v171_v8 = vsub.f32 %v169_v53, %v170_v49  ;;  %v172_v9 = vmul.f32 0.014956751, %v544_v21  ;;  %v179_v12 = vadd.f32 %v178_v57, %v590_v56 }
  0x47   :  { %v322_v45 = vpop.eup %321  ;;  %v67_v50 = vmul.f32 %v573_v41, %v573_v41  ;;  %v144_v14 = vmul.f32 1.442695, %v143_v62  ;;  %v180_v15 = vmul.f32 0.19106188, %v532_v7  ;;  %v154_v18 = vmul.f32 1.442695, %v153_v1 }
  0x48   :  { %v324_v58 = vpop.eup %323  ;;  %v75_v59 = vmul.f32 0.6931472, %v322_v45  ;;  %v89_v63 = vmul.f32 0.0007936508, %v88_v46  ;;  %v605_v19 = vadd.f32 -2.470078, %v550_v29  ;;  %v163_v24 = vsub.f32 %v161_v2, %v162_v3 }
  0x49   :  { %v68_v4 = vmul.f32 0.0007936508, %v67_v50  ;;  %v598_v10 = vpop.eup %325  ;;  %v96_v13 = vmul.f32 0.6931472, %v324_v58  ;;  %v188_v20 = vmul.f32 -1.3056674, %v526_v0  ;;  %331 = vpow2.f32 %v144_v14 }
  0x4a   :  { %v602_v16 = vmul.f32 %v309_v54, %v75_v59  ;;  %v328_v22 = vpop.eup %327  ;;  %v90_v23 = vsub.f32 0.0027777778, %v89_v63  ;;  %v182_v25 = vmul.f32 0.03650464, %v544_v21  ;;  %v107_v28 = vmul.f32 %v106_v61, %v105_v60 }
  0x4b   :  { %v330_v26 = vpop.eup %329  ;;  %v69_v27 = vsub.f32 0.0027777778, %v68_v4  ;;  %v611_v30 = vmul.f32 %v598_v10, %v598_v10  ;;  %v173_v31 = vsub.f32 %v171_v8, %v172_v9  ;;  %v613_v32 = vmul.f32 %v310_v38, %v96_v13 }
  0x4c   :  { %333 = vpow2.f32 %v154_v18  ;;  %v164_v33 = vmul.f32 1.442695, %v163_v24  ;;  %v181_v39 = vsub.f32 %v179_v12, %v180_v15  ;;  %v77_v42 = vsub.f32 %v602_v16, %v534_v11 }
  0x4d   :  { %v617_v43 = vmul.f32 0.6931472, %v328_v22  ;;  %v174_v44 = vmul.f32 1.442695, %v173_v31  ;;  %v189_v45 = vadd.f32 %v188_v20, %v605_v19  ;;  %v620_v47 = vmul.f32 %v90_v23, %v88_v46 }
  0x4e   :  { %335 = vpow2.f32 %v164_v33  ;;  %v183_v48 = vsub.f32 %v181_v39, %v182_v25  ;;  %v190_v49 = vmul.f32 0.27099162, %v532_v7  ;;  %v110_v38 = vmul.f32 0.0007936508, %v611_v30 }
  0x4f   :  { %337 = vpow2.f32 %v174_v44  ;;  %v192_v51 = vmul.f32 0.073436454, %v544_v21  ;;  %v197_v52 = vadd.f32 -2.3935857, %v550_v29  ;;  %v125_v53 = vmul.f32 %v330_v26, %v107_v28 }
  0x50   :  { %v184_v54 = vmul.f32 1.442695, %v183_v48  ;;  %v191_v57 = vsub.f32 %v189_v45, %v190_v49  ;;  %v198_v58 = vmul.f32 -1.0238808, %v526_v0  ;;  %v627_v59 = vmul.f32 %v69_v27, %v67_v50 }
  0x51   :  { %v200_v46 = vmul.f32 0.3591982, %v532_v7  ;;  %v202_v60 = vmul.f32 0.12902336, %v544_v21  ;;  %v207_v61 = vadd.f32 -2.356774, %v550_v29  ;;  %v98_v2 = vsub.f32 %v613_v32, %v530_v6 }
  0x52   :  { %339 = vpow2.f32 %v184_v54  ;;  %v193_v62 = vsub.f32 %v191_v57, %v192_v51  ;;  %v199_v63 = vadd.f32 %v198_v58, %v197_v52  ;;  %v208_v1 = vmul.f32 -0.7929813, %v526_v0 }
  0x53   :  { %v210_v3 = vmul.f32 0.45249376, %v532_v7  ;;  %v212_v4 = vmul.f32 0.20475058, %v544_v21  ;;  %v217_v50 = vmul.f32 -0.6023814, %v526_v0  ;;  %v332_v8 = vpop.eup %331  ;;  %v644_v44 = vmul.f32 %v125_v53, %v587_v55 }
  0x54   :  { %v194_v9 = vmul.f32 1.442695, %v193_v62  ;;  %v201_v13 = vsub.f32 %v199_v63, %v200_v46  ;;  %v209_v14 = vadd.f32 %v208_v1, %v207_v61  ;;  %v219_v12 = vmul.f32 0.5475063, %v532_v7 }
  0x55   :  { %v92_v15 = vsub.f32 0.083333336, %v620_v47  ;;  %v218_v18 = vadd.f32 %v217_v50, %v207_v61  ;;  %v221_v20 = vmul.f32 0.2997631, %v544_v21  ;;  %v226_v22 = vmul.f32 -0.4450351, %v526_v0 }
  0x56   :  { %v334_v23 = vpop.eup %333  ;;  %v111_v24 = vsub.f32 0.0027777778, %v110_v38  ;;  %341 = vpow2.f32 %v194_v9  ;;  %v203_v25 = vsub.f32 %v201_v13, %v202_v60  ;;  %v211_v26 = vsub.f32 %v209_v14, %v210_v3 }
  0x57   :  { %v156_v27 = vadd.f32 %v334_v23, %v332_v8  ;;  %v220_v28 = vsub.f32 %v218_v18, %v219_v12  ;;  %v227_v31 = vadd.f32 %v226_v22, %v197_v52  ;;  %v228_v33 = vmul.f32 0.6408018, %v532_v7 }
  0x58   :  { %v336_v39 = vpop.eup %335  ;;  %v204_v45 = vmul.f32 1.442695, %v203_v25  ;;  %v213_v48 = vsub.f32 %v211_v26, %v212_v4  ;;  %v230_v49 = vmul.f32 0.41062692, %v544_v21  ;;  %v235_v58 = vmul.f32 -0.31607005, %v526_v0 }
  0x59   :  { %v338_v51 = vpop.eup %337  ;;  %v166_v54 = vadd.f32 %v336_v39, %v156_v27  ;;  %v222_v57 = vsub.f32 %v220_v28, %v221_v20  ;;  %v229_v38 = vsub.f32 %v227_v31, %v228_v33  ;;  %v71_v46 = vsub.f32 0.083333336, %v627_v59 }
  0x5a   :  { %343 = vpow2.f32 %v204_v45  ;;  %v214_v52 = vmul.f32 1.442695, %v213_v48  ;;  %v237_v60 = vmul.f32 0.7290084, %v532_v7  ;;  %v236_v53 = vadd.f32 %v235_v58, %v605_v19 }
  0x5b   :  { %v176_v61 = vadd.f32 %v338_v51, %v166_v54  ;;  %v223_v62 = vmul.f32 1.442695, %v222_v57  ;;  %v231_v55 = vsub.f32 %v229_v38, %v230_v49  ;;  %v652_v1 = vmul.f32 %v111_v24, %v611_v30 }
  0x5c   :  { %v340_v63 = vpop.eup %339  ;;  %345 = vpow2.f32 %v214_v52  ;;  %v239_v3 = vmul.f32 0.53145325, %v544_v21  ;;  %v244_v4 = vmul.f32 -0.21203285, %v526_v0  ;;  %v238_v8 = vsub.f32 %v236_v53, %v237_v60 }
  0x5d   :  { %v186_v50 = vadd.f32 %v340_v63, %v176_v61  ;;  %347 = vpow2.f32 %v223_v62  ;;  %v232_v59 = vmul.f32 1.442695, %v231_v55  ;;  %v246_v13 = vmul.f32 0.80893815, %v532_v7 }
  0x5e   :  { %v245_v9 = vadd.f32 %v244_v4, %v590_v56  ;;  %v248_v14 = vmul.f32 0.65438086, %v544_v21  ;;  %v253_v19 = vmul.f32 -0.13044792, %v526_v0  ;;  %v240_v30 = vsub.f32 %v238_v8, %v239_v3 }
  0x5f   :  { %349 = vpow2.f32 %v232_v59  ;;  %v255_v12 = vmul.f32 0.8777022, %v532_v7  ;;  %v257_v18 = vmul.f32 0.7703612, %v544_v21  ;;  %v262_v24 = vmul.f32 -0.069547735, %v526_v0 }
  0x60   :  { %v342_v20 = vpop.eup %341  ;;  %v247_v22 = vsub.f32 %v245_v9, %v246_v13  ;;  %v254_v23 = vadd.f32 %v253_v19, %v571_v40  ;;  %v264_v56 = vmul.f32 0.9328156, %v532_v7  ;;  %v241_v26 = vmul.f32 1.442695, %v240_v30 }
  0x61   :  { %v196_v25 = vadd.f32 %v342_v20, %v186_v50  ;;  %v266_v27 = vmul.f32 0.87014496, %v544_v21  ;;  %v271_v28 = vmul.f32 -0.028103724, %v526_v0  ;;  %v263_v39 = vadd.f32 %v262_v24, %v563_v36 }
  0x62   :  { %v249_v31 = vsub.f32 %v247_v22, %v248_v14  ;;  %v256_v33 = vsub.f32 %v254_v23, %v255_v12  ;;  %v273_v45 = vmul.f32 0.97228754, %v532_v7  ;;  %351 = vpow2.f32 %v241_v26 }
  0x63   :  { %v272_v48 = vadd.f32 %v271_v28, %v560_v35  ;;  %v275_v40 = vmul.f32 0.945343, %v544_v21  ;;  %v280_v49 = vmul.f32 -0.0053136246, %v526_v0  ;;  %v265_v38 = vsub.f32 %v263_v39, %v264_v56 }
  0x64   :  { %v344_v51 = vpop.eup %343  ;;  %v250_v54 = vmul.f32 1.442695, %v249_v31  ;;  %v258_v57 = vsub.f32 %v256_v33, %v257_v18  ;;  %v282_v58 = vmul.f32 0.9947005, %v532_v7  ;;  %v284_v36 = vmul.f32 0.989429, %v544_v21 }
  0x65   :  { %v206_v52 = vadd.f32 %v344_v51, %v196_v25  ;;  %v274_v60 = vsub.f32 %v272_v48, %v273_v45  ;;  %v281_v61 = vadd.f32 %v280_v49, %v557_v34  ;;  %v118_v35 = vmul.f32 %v595_v5, %v617_v43 }
  0x66   :  { %v346_v62 = vpop.eup %345  ;;  %353 = vpow2.f32 %v250_v54  ;;  %v259_v55 = vmul.f32 1.442695, %v258_v57  ;;  %v267_v53 = vsub.f32 %v265_v38, %v266_v27  ;;  %v93_v3 = vmul.f32 %v565_v37, %v92_v15 }
  0x67   :  { %v348_v63 = vpop.eup %347  ;;  %v216_v4 = vadd.f32 %v346_v62, %v206_v52  ;;  %v276_v7 = vsub.f32 %v274_v60, %v275_v40  ;;  %v283_v50 = vsub.f32 %v281_v61, %v282_v58  ;;  %v72_v59 = vmul.f32 %v573_v41, %v71_v46 }
  0x68   :  { %v113_v34 = vsub.f32 0.083333336, %v652_v1  ;;  %355 = vpow2.f32 %v259_v55  ;;  %v268_v21 = vmul.f32 1.442695, %v267_v53  ;;  %v99_v41 = vadd.f32 %v98_v2, %v93_v3 }
  0x69   :  { %v350_v8 = vpop.eup %349  ;;  %357 = vlog2.f32 %v644_v44  ;;  %v225_v5 = vadd.f32 %v348_v63, %v216_v4  ;;  %v277_v43 = vmul.f32 1.442695, %v276_v7  ;;  %v285_v9 = vsub.f32 %v283_v50, %v284_v36 }
  0x6a   :  { %359 = vpow2.f32 %v268_v21  ;;  %v78_v37 = vadd.f32 %v77_v42, %v72_v59  ;;  %v114_v15 = vmul.f32 %v598_v10, %v113_v34  ;;  %v119_v46 = vsub.f32 %v118_v35, %v540_v17  ;;  %v57_v17 = vld [vmem:[%s711_s3] sm:$0xff] }
  0x6b   :  { %v234_v13 = vadd.f32 %v350_v8, %v225_v5  ;;  %361 = vpow2.f32 %v277_v43  ;;  %v286_v47 = vmul.f32 1.442695, %v285_v9  ;;  %v134_v25 = vmul.f32 %v57_v17, %v526_v0 }
  0x6c   :  { %v352_v44 = vpop.eup %351  ;;  %v120_v19 = vadd.f32 %v119_v46, %v114_v15  ;;  %v121_v30 = vsub.f32 %v78_v37, %v99_v41 }
  0x6d   :  { %363 = vpow2.f32 %v286_v47  ;;  %v243_v1 = vadd.f32 %v352_v44, %v234_v13 }
  0x6e   :  { %v122_v16 = vsub.f32 %v121_v30, %v120_v19 }
  0x70   :  { %v354_v14 = vpop.eup %353  ;;  %v312_v2 = vadd.f32 -0.9189385, %v122_v16 }
  0x71   :  { %v252_v12 = vadd.f32 %v354_v14, %v243_v1 }
  0x72   :  { %v356_v18 = vpop.eup %355 }
  0x73   :  { %v358_v20 = vpop.eup %357  ;;  %v261_v22 = vadd.f32 %v356_v18, %v252_v12 }
  0x74   :  { %v360_v11 = vpop.eup %359  ;;  %v128_v10 = vmul.f32 0.6931472, %v358_v20 }
  0x75   :  { %v362_v42 = vpop.eup %361  ;;  %v270_v23 = vadd.f32 %v360_v11, %v261_v22 }
  0x76   :  { %v129_v56 = vadd.f32 %v312_v2, %v128_v10 }
  0x77   :  { %v364_v6 = vpop.eup %363  ;;  %v279_v32 = vadd.f32 %v362_v42, %v270_v23 }
  0x78   :  { %v135_v26 = vadd.f32 %v134_v25, %v129_v56 }
  0x79   :  { %v288_v24 = vadd.f32 %v364_v6, %v279_v32 }
  0x7a   :  { %v136_v27 = vsub.f32 %v135_v26, %v550_v29 }
  0x7b   :  { %365 = vlog2.f32 %v288_v24 }
  0x85   :  { %v366_v28 = vpop.eup %365 }
  0x86   :  { %v290_v31 = vmul.f32 0.6931472, %v366_v28 }
  0x88   :  { %v291_v33 = vadd.f32 %v290_v31, %v136_v27 }
  0x8a   :  { %292 = vst [vmem:[#allocation8] sm:$0xff] %v291_v33 }
  0x8b   :  { %444 = shalt.err (!%p441_p0)
}
  0x8c   :  { %s445_s28 = scalar_lea.hbm %s712_s4, 128 }
  0x8d   :  { %p446_p1 = scmp.ne.s32.totalorder %s712_s4, %s445_s28  ;;  %p449_p2 = scmp.lt.u32.totalorder %s445_s28, %s712_s4 }
  0x8f   :  { %p451_p3 = pnand %p449_p2, %p446_p1 }
  0x91   :  { %454 = shalt.err (!%p451_p3)
}
  0x92   :  { %302 = dma.vmem_to_hbm [thread:$0]  %s300_s25, 128, %s712_s4, [#allocation4]  }
  0x93   :  { %459 = dma.done.wait [#allocation4], 128  }
  0x94   :  { %460 = vsyncadd [#allocation4], 4294967168 }
  0x95   :  { %306 = vsyncpa [#allocation3], 1 }
  0x96   :  { %307 = vsyncpa [#allocation6], 1 }
  0x97   :  { %308 = vsyncpa [#allocation4], 1 }

</bundles_post_ra>
